<compile_context>
chip_gen: v6e
topology: v6e:2x2x1
jax: 0.10.0
libtpu: 0.0.40
codegen_flags: <defaults>
</compile_context>

<pallas_src>
import numpy as np
import jax
import jax.numpy as jnp
from jax.experimental import pallas as pl
from jax.experimental.pallas import tpu as pltpu

_MXU_ROWS = 256      # target rows per MXU push (v6e/v7x tile height; fine on v5e)
_SENTINEL = -3e38    # global_max_pool identity for padding nodes


def _ceil_to(v, m):
    return -(-int(v) // m) * m


def _tile_bytes(shape, bpe):
    """VMEM footprint of one buffer, accounting for (sublane, 128-lane) padding."""
    shape = tuple(int(s) for s in shape)
    if len(shape) < 2:
        shape = (1,) + shape
    *lead, r, c = shape
    sub = 8 if bpe >= 4 else 32 // bpe
    rp = _ceil_to(max(r, 1), sub)
    cp = _ceil_to(max(c, 1), 128)
    lead_n = int(np.prod(lead)) if lead else 1
    return lead_n * rp * cp * bpe


def _vmem_limit_bytes(gpb, npad, fin, hdims):
    """Explicit scoped-VMEM budget from block + resident sizes (perf review)."""
    h0, h1, h2 = hdims
    hmax = max(fin, h0, h1, h2)
    blocks = (_tile_bytes((gpb, npad, fin), 2) + _tile_bytes((gpb, npad, npad), 2)
              + 2 * _tile_bytes((gpb, npad, 1), 4) + _tile_bytes((gpb, h2), 4))
    residents = 2 * (_tile_bytes((fin, h0), 2) + _tile_bytes((h0, h1), 2)
                     + _tile_bytes((h1, h2), 2))
    residents += (_tile_bytes((1, h0), 4) + _tile_bytes((1, h1), 4)
                  + _tile_bytes((1, h2), 4))
    acts = 8 * _tile_bytes((gpb * npad, hmax), 4)     # f32 intermediates headroom
    need = 2 * (blocks + residents) + acts + (2 << 20)
    # Raise v5e's 16 MiB scoped default; never exceed v7x's 64 MiB physical.
    return int(min(max(2 * need, 32 << 20), 64 << 20))


def _sage_pool_kernel(x_ref, a_ref, inv_ref, m_ref,
                      wl1_ref, wr1_ref, b1_ref,
                      wl2_ref, wr2_ref, b2_ref,
                      wl3_ref, wr3_ref, b3_ref,
                      out_ref):
    """3x SAGEConv + masked global_max_pool for one group of gpb graphs."""
    f32, bf16 = jnp.float32, jnp.bfloat16

    a = a_ref[...]                                    # [B, N, N] bf16 (0/1 counts)
    inv = inv_ref[...]                                # [B, N, 1] f32 (1 / in-degree)
    mask = m_ref[...]                                 # [B, N, 1] f32 (1 = real node)
    bsz, npad, _ = a.shape
    bn = bsz * npad

    def neigh_mean(h_bf):                             # [BN, F] bf16 -> [BN, F] bf16
        h3 = h_bf.reshape(bsz, npad, h_bf.shape[-1])
        # block-diagonal aggregation: per-graph [N, N] x [N, F], f32 accumulate
        s = jnp.einsum('bnm,bmf->bnf', a, h3, preferred_element_type=f32)
        return (s * inv).reshape(bn, -1).astype(bf16)  # f32 1/deg row scale

    def sage(h_bf, wl_ref, wr_ref, b_ref):
        # SAGEConv: W_l * mean_neigh(h) + W_r * h + b.  Two dots accumulating
        # in f32 (no concat copy); relu stays f32.
        agg = neigh_mean(h_bf)
        z = (jnp.dot(agg, wl_ref[...], preferred_element_type=f32)
             + jnp.dot(h_bf, wr_ref[...], preferred_element_type=f32)
             + b_ref[...])
        return jnp.maximum(z, 0.0)

    h = sage(x_ref[...].reshape(bn, -1), wl1_ref, wr1_ref, b1_ref)
    h = sage(h.astype(bf16), wl2_ref, wr2_ref, b2_ref)
    h = sage(h.astype(bf16), wl3_ref, wr3_ref, b3_ref)          # [BN, H2] f32

    # global_max_pool over the valid nodes of each graph.  NOTE: an entirely
    # padded (empty) graph pools to the -3e38 sentinel; padded graph slots are
    # sliced off in the wrapper before the head.
    hb = h.reshape(bsz, npad, h.shape[-1])
    out_ref[...] = jnp.max(jnp.where(mask > 0.0, hb, _SENTINEL), axis=1)


def _densify_per_graph(x, edge_index, batch_np, counts, npad, g_pad):
    """Host-side glue: split the sorted-batch node set into padded per-graph
    blocks (adjacency is block-diagonal, so graphs are independent)."""
    n, fin = x.shape
    f32 = jnp.float32
    starts = np.concatenate([[0], np.cumsum(counts)[:-1]]).astype(np.int64)
    local = np.arange(n) - starts[batch_np]           # local node index per graph

    src = np.asarray(edge_index[0])
    dst = np.asarray(edge_index[1])
    assert np.all(batch_np[src] == batch_np[dst]), "edges must stay within a graph"

    xg = jnp.zeros((g_pad, npad, fin), f32).at[batch_np, local].set(x)
    adj = jnp.zeros((g_pad, npad, npad), f32).at[
        batch_np[dst], local[dst], local[src]].add(1.0)         # dst-row, src-col
    deg = adj.sum(axis=-1, keepdims=True)
    inv = jnp.where(deg > 0, 1.0 / jnp.maximum(deg, 1.0), 0.0)  # f32 mean scale
    maskg = jnp.zeros((g_pad, npad, 1), f32).at[batch_np, local, 0].set(1.0)
    return xg, adj, inv, maskg, starts


def _head(pooled, news_x, params):
    """full1/full2/softmax head + root-news branch + lin_cat + sigmoid, batched
    over all graphs as plain XLA matmuls (M = num_graphs)."""
    (_wl1, _bl1, _wr1, _wl2, _bl2, _wr2, _wl3, _bl3, _wr3,
     wf1, bf1, wf2, bf2, ws, bs, wn, bnews, wch, wcn, bc) = params
    hg = jax.nn.relu(pooled @ wf1 + bf1)
    hg = jax.nn.relu(hg @ wf2 + bf2)
    hg = jax.nn.relu(hg @ ws + bs)
    news = jax.nn.relu(news_x @ wn + bnews)
    # lin_cat(cat([hg, news], -1)) == hg @ Wc_h + news @ Wc_n + bc
    return jax.nn.sigmoid(hg @ wch + news @ wcn + bc)


def init_params(key, in_channels, hidden_channels, out_channels):
    h0, h1, h2, h3, h4 = hidden_channels

    def lin(k, fan_in, fan_out, bias=True):
        k1, k2 = jax.random.split(k)
        w = 0.1 * jax.random.normal(k1, (fan_in, fan_out), jnp.float32)
        b = 0.1 * jax.random.normal(k2, (1, fan_out), jnp.float32) if bias else None
        return w, b

    keys = jax.random.split(key, 12)
    wl1, bl1 = lin(keys[0], in_channels, h0)
    wr1, _ = lin(keys[1], in_channels, h0, bias=False)   # SAGEConv lin_r: no bias
    wl2, bl2 = lin(keys[2], h0, h1)
    wr2, _ = lin(keys[3], h0, h1, bias=False)
    wl3, bl3 = lin(keys[4], h1, h2)
    wr3, _ = lin(keys[5], h1, h2, bias=False)
    wf1, bf1 = lin(keys[6], h2, h3)
    wf2, bf2 = lin(keys[7], h3, h4)
    ws, bs = lin(keys[8], h4, out_channels)
    wn, bn = lin(keys[9], in_channels, out_channels)
    wc, bc = lin(keys[10], 2 * out_channels, 1)
    wch, wcn = wc[:out_channels], wc[out_channels:]      # [C,1] each
    return (wl1, bl1, wr1, wl2, bl2, wr2, wl3, bl3, wr3,
            wf1, bf1, wf2, bf2, ws, bs, wn, bn, wch, wcn, bc)


def net_forward(x, edge_index, batch, params, num_graphs):
    (wl1, bl1, wr1, wl2, bl2, wr2, wl3, bl3, wr3,
     wf1, bf1, wf2, bf2, ws, bs, wn, bnews, wch, wcn, bc) = params
    bf16 = jnp.bfloat16
    fin = x.shape[1]
    hdims = (wl1.shape[1], wl2.shape[1], wl3.shape[1])

    batch_np = np.asarray(batch)
    assert np.all(np.diff(batch_np) >= 0), \
        "batch must be sorted: root/news branch takes the first node of each graph"
    assert int(batch_np.max()) < num_graphs
    counts = np.bincount(batch_np, minlength=num_graphs)
    assert np.all(counts > 0), "every graph needs at least one (root) node"

    # Npad: multiple of 16 (bf16 sublane pack).  Dense adjacency is capped —
    # TODO(synk): node-row grid axis / CSR-gather aggregation beyond this.
    npad = max(16, _ceil_to(counts.max(), 16))
    assert npad <= 2048, "dense per-graph adjacency too large for VMEM tiling"

    # Graphs per grid step: fill ~256 MXU rows, but keep >= 2 grid steps so
    # v7x's two TensorCores both get work via the "parallel" grid axis.
    gpb = max(1, _MXU_ROWS // npad)
    gpb = min(gpb, num_graphs)
    if num_graphs >= 2:
        gpb = min(gpb, (num_graphs + 1) // 2)
    num_steps = -(-num_graphs // gpb)
    g_pad = num_steps * gpb

    xg, adj, inv, maskg, starts = _densify_per_graph(
        x, edge_index, batch_np, counts, npad, g_pad)

    # NOTE: feature/hidden dims are left un-padded in HBM (VMEM lane padding to
    # 128 happens anyway; padding HBM arrays would only inflate DMA bytes).
    inputs = (xg.astype(bf16), adj.astype(bf16), inv, maskg,
              wl1.astype(bf16), wr1.astype(bf16), bl1,
              wl2.astype(bf16), wr2.astype(bf16), bl2,
              wl3.astype(bf16), wr3.astype(bf16), bl3)

    def group_spec(*tail):           # one [gpb, Npad, *] group of graphs per step
        nd = len(tail)
        return pl.BlockSpec((gpb,) + tail, lambda s, _nd=nd: (s,) + (0,) * _nd)

    def resident_spec(arr):          # full-array VMEM resident (constant index map)
        return pl.BlockSpec(arr.shape, lambda s, _nd=arr.ndim: (0,) * _nd)

    in_specs = [group_spec(npad, fin), group_spec(npad, npad),
                group_spec(npad, 1), group_spec(npad, 1)]
    in_specs += [resident_spec(arr) for arr in inputs[4:]]

    pooled = pl.pallas_call(
        _sage_pool_kernel,
        out_shape=jax.ShapeDtypeStruct((num_steps, gpb, hdims[2]), jnp.float32),
        grid=(num_steps,),
        in_specs=in_specs,
        out_specs=pl.BlockSpec((None, gpb, hdims[2]), lambda s: (s, 0, 0)),
        compiler_params=pltpu.CompilerParams(
            dimension_semantics=("parallel",),
            vmem_limit_bytes=_vmem_limit_bytes(gpb, npad, fin, hdims)),
    )(*inputs)

    pooled = pooled.reshape(g_pad, hdims[2])[:num_graphs]       # drop padded graphs
    news_x = x[jnp.asarray(starts[:num_graphs], jnp.int32)]     # root = first node
    return _head(pooled, news_x, params)


def net_reference(x, edge_index, batch, params, num_graphs):
    """Plain-JAX reference mirroring the kernel's mixed precision (bf16 MXU
    operands, f32 accumulation / 1-per-degree scaling / elementwise)."""
    (wl1, bl1, wr1, wl2, bl2, wr2, wl3, bl3, wr3, *_rest) = params
    f32, bf16 = jnp.float32, jnp.bfloat16

    n = x.shape[0]
    src, dst = edge_index[0], edge_index[1]
    adj = jnp.zeros((n, n), f32).at[dst, src].add(1.0)
    deg = adj.sum(axis=1, keepdims=True)
    inv = jnp.where(deg > 0, 1.0 / jnp.maximum(deg, 1.0), 0.0)
    m = (batch[None, :] == jnp.arange(num_graphs)[:, None]).astype(f32)
    roots = jnp.argmax(m, axis=1)                    # first node of each graph

    def bdot(p, q):
        return jnp.dot(p.astype(bf16), q.astype(bf16), preferred_element_type=f32)

    def sage(h, wl, bl, wr):
        agg = (bdot(adj, h) * inv).astype(bf16)
        return jax.nn.relu(bdot(agg, wl) + bdot(h, wr) + bl)

    h = sage(x, wl1, bl1, wr1)
    h = sage(h, wl2, bl2, wr2)
    h = sage(h, wl3, bl3, wr3)
    pooled = jnp.max(jnp.where(m[:, :, None] > 0.0, h[None, :, :], _SENTINEL), axis=1)
    return _head(pooled, x[roots], params)


if __name__ == "__main__":
    # Small synthetic graph batch: 2 graphs x 8 nodes, ring edges within each graph.
    IN_CHANNELS = 8
    HIDDEN = [32, 32, 32, 32, 16]
    OUT_CHANNELS = 8
    NUM_NODES = 16
    NUM_GRAPHS = 2

    key = jax.random.PRNGKey(0)
    kx, kp = jax.random.split(key)
    x = jax.random.normal(kx, (NUM_NODES, IN_CHANNELS), jnp.float32)

    edges = []
    for start in (0, 8):
        for i in range(8):
            u = start + i
            v = start + (i + 1) % 8
            edges.append((u, v))
            edges.append((v, u))
    edge_index = jnp.asarray(edges, dtype=jnp.int32).T          # [2, E]
    batch = jnp.asarray([0] * 8 + [1] * 8, dtype=jnp.int32)     # [N], sorted

    params = init_params(kp, IN_CHANNELS, HIDDEN, OUT_CHANNELS)

    out = net_forward(x, edge_index, batch, params, NUM_GRAPHS)
    out = jax.block_until_ready(out)

    ref = net_reference(x, edge_index, batch, params, NUM_GRAPHS)
    assert out.shape == (NUM_GRAPHS, 1)
    assert jnp.allclose(out, ref, atol=2e-3), (out, ref)
    print("KERNEL_OK")
</pallas_src>

<mosaic_0001>
module attributes {stable_mosaic.version = 11 : i64} {
  func.func @_sage_pool_kernel(%arg0: i32, %arg1: memref<1x16x8xbf16, #tpu.memory_space<vmem>>, %arg2: memref<1x16x16xbf16, #tpu.memory_space<vmem>>, %arg3: memref<1x16x1xf32, #tpu.memory_space<vmem>>, %arg4: memref<1x16x1xf32, #tpu.memory_space<vmem>>, %arg5: memref<8x32xbf16, #tpu.memory_space<vmem>>, %arg6: memref<8x32xbf16, #tpu.memory_space<vmem>>, %arg7: memref<1x32xf32, #tpu.memory_space<vmem>>, %arg8: memref<32x32xbf16, #tpu.memory_space<vmem>>, %arg9: memref<32x32xbf16, #tpu.memory_space<vmem>>, %arg10: memref<1x32xf32, #tpu.memory_space<vmem>>, %arg11: memref<32x32xbf16, #tpu.memory_space<vmem>>, %arg12: memref<32x32xbf16, #tpu.memory_space<vmem>>, %arg13: memref<1x32xf32, #tpu.memory_space<vmem>>, %arg14: memref<1x1x32xf32, #tpu.memory_space<vmem>>) attributes {dimension_semantics = [#tpu.dimension_semantics<parallel>], iteration_bounds = array<i64: 2>, scalar_prefetch = 0 : i64, scratch_operands = 0 : i64, tpu.core_type = #tpu.core_type<tc>, window_params = [{transform_indices = @transform_0, window_bounds = array<i64: 1, 16, 8>}, {transform_indices = @transform_1, window_bounds = array<i64: 1, 16, 16>}, {transform_indices = @transform_2, window_bounds = array<i64: 1, 16, 1>}, {transform_indices = @transform_3, window_bounds = array<i64: 1, 16, 1>}, {pipeline_mode = #tpu.pipeline_mode<synchronous>, transform_indices = @transform_4, window_bounds = array<i64: 8, 32>}, {pipeline_mode = #tpu.pipeline_mode<synchronous>, transform_indices = @transform_5, window_bounds = array<i64: 8, 32>}, {pipeline_mode = #tpu.pipeline_mode<synchronous>, transform_indices = @transform_6, window_bounds = array<i64: 1, 32>}, {pipeline_mode = #tpu.pipeline_mode<synchronous>, transform_indices = @transform_7, window_bounds = array<i64: 32, 32>}, {pipeline_mode = #tpu.pipeline_mode<synchronous>, transform_indices = @transform_8, window_bounds = array<i64: 32, 32>}, {pipeline_mode = #tpu.pipeline_mode<synchronous>, transform_indices = @transform_9, window_bounds = array<i64: 1, 32>}, {pipeline_mode = #tpu.pipeline_mode<synchronous>, transform_indices = @transform_10, window_bounds = array<i64: 32, 32>}, {pipeline_mode = #tpu.pipeline_mode<synchronous>, transform_indices = @transform_11, window_bounds = array<i64: 32, 32>}, {pipeline_mode = #tpu.pipeline_mode<synchronous>, transform_indices = @transform_12, window_bounds = array<i64: 1, 32>}, {transform_indices = @transform_13, window_bounds = array<i64: 1, 1, 32>}]} {
    %c0 = arith.constant 0 : index
    %c0_0 = arith.constant 0 : index
    %c0_1 = arith.constant 0 : index
    %0 = vector.load %arg2[%c0, %c0_0, %c0_1] : memref<1x16x16xbf16, #tpu.memory_space<vmem>>, vector<1x16x16xbf16>
    %c0_2 = arith.constant 0 : index
    %c0_3 = arith.constant 0 : index
    %c0_4 = arith.constant 0 : index
    %1 = vector.load %arg3[%c0_2, %c0_3, %c0_4] : memref<1x16x1xf32, #tpu.memory_space<vmem>>, vector<1x16x1xf32>
    %c0_5 = arith.constant 0 : index
    %c0_6 = arith.constant 0 : index
    %c0_7 = arith.constant 0 : index
    %2 = vector.load %arg4[%c0_5, %c0_6, %c0_7] : memref<1x16x1xf32, #tpu.memory_space<vmem>>, vector<1x16x1xf32>
    %c0_8 = arith.constant 0 : index
    %c0_9 = arith.constant 0 : index
    %c0_10 = arith.constant 0 : index
    %3 = vector.load %arg1[%c0_8, %c0_9, %c0_10] : memref<1x16x8xbf16, #tpu.memory_space<vmem>>, vector<1x16x8xbf16>
    %4 = vector.shape_cast %3 : vector<1x16x8xbf16> to vector<16x8xbf16>
    %5 = vector.shape_cast %4 : vector<16x8xbf16> to vector<1x16x8xbf16>
    "tpu.trace_start"() <{level = 10 : i32, message = "bnm,bmf->bnf"}> : () -> ()
    %cst = arith.constant dense<0.000000e+00> : vector<1x16x8xf32>
    %6 = tpu.matmul %0, %5, %cst {dimension_numbers = #tpu.dot_dimension_numbers<[2], [1], [1], [2], [0, 0, 0, 1, 1, 2], [0], [0]>} : vector<1x16x16xbf16>, vector<1x16x8xbf16>, vector<1x16x8xf32> -> vector<1x16x8xf32>
    "tpu.trace_stop"() : () -> ()
    %7 = vector.broadcast %1 : vector<1x16x1xf32> to vector<1x16x8xf32>
    %8 = arith.mulf %6, %7 : vector<1x16x8xf32>
    %9 = vector.shape_cast %8 : vector<1x16x8xf32> to vector<16x8xf32>
    %10 = arith.truncf %9 : vector<16x8xf32> to vector<16x8xbf16>
    %c0_11 = arith.constant 0 : index
    %c0_12 = arith.constant 0 : index
    %11 = vector.load %arg5[%c0_11, %c0_12] : memref<8x32xbf16, #tpu.memory_space<vmem>>, vector<8x32xbf16>
    %cst_13 = arith.constant dense<0.000000e+00> : vector<16x32xf32>
    %12 = tpu.matmul %10, %11, %cst_13 {dimension_numbers = #tpu.dot_dimension_numbers<[1], [0], [0], [1], [0, 0, 1, 1], [], []>} : vector<16x8xbf16>, vector<8x32xbf16>, vector<16x32xf32> -> vector<16x32xf32>
    %c0_14 = arith.constant 0 : index
    %c0_15 = arith.constant 0 : index
    %13 = vector.load %arg6[%c0_14, %c0_15] : memref<8x32xbf16, #tpu.memory_space<vmem>>, vector<8x32xbf16>
    %cst_16 = arith.constant dense<0.000000e+00> : vector<16x32xf32>
    %14 = tpu.matmul %4, %13, %cst_16 {dimension_numbers = #tpu.dot_dimension_numbers<[1], [0], [0], [1], [0, 0, 1, 1], [], []>} : vector<16x8xbf16>, vector<8x32xbf16>, vector<16x32xf32> -> vector<16x32xf32>
    %15 = arith.addf %12, %14 : vector<16x32xf32>
    %c0_17 = arith.constant 0 : index
    %c0_18 = arith.constant 0 : index
    %16 = vector.load %arg7[%c0_17, %c0_18] : memref<1x32xf32, #tpu.memory_space<vmem>>, vector<1x32xf32>
    %17 = vector.broadcast %16 : vector<1x32xf32> to vector<16x32xf32>
    %18 = arith.addf %15, %17 : vector<16x32xf32>
    %cst_19 = arith.constant 0.000000e+00 : f32
    %19 = vector.broadcast %cst_19 : f32 to vector<16x32xf32>
    %20 = arith.maximumf %18, %19 : vector<16x32xf32>
    %21 = arith.truncf %20 : vector<16x32xf32> to vector<16x32xbf16>
    %22 = vector.shape_cast %21 : vector<16x32xbf16> to vector<1x16x32xbf16>
    "tpu.trace_start"() <{level = 10 : i32, message = "bnm,bmf->bnf"}> : () -> ()
    %cst_20 = arith.constant dense<0.000000e+00> : vector<1x16x32xf32>
    %23 = tpu.matmul %0, %22, %cst_20 {dimension_numbers = #tpu.dot_dimension_numbers<[2], [1], [1], [2], [0, 0, 0, 1, 1, 2], [0], [0]>} : vector<1x16x16xbf16>, vector<1x16x32xbf16>, vector<1x16x32xf32> -> vector<1x16x32xf32>
    "tpu.trace_stop"() : () -> ()
    %24 = vector.broadcast %1 : vector<1x16x1xf32> to vector<1x16x32xf32>
    %25 = arith.mulf %23, %24 : vector<1x16x32xf32>
    %26 = vector.shape_cast %25 : vector<1x16x32xf32> to vector<16x32xf32>
    %27 = arith.truncf %26 : vector<16x32xf32> to vector<16x32xbf16>
    %c0_21 = arith.constant 0 : index
    %c0_22 = arith.constant 0 : index
    %28 = vector.load %arg8[%c0_21, %c0_22] : memref<32x32xbf16, #tpu.memory_space<vmem>>, vector<32x32xbf16>
    %cst_23 = arith.constant dense<0.000000e+00> : vector<16x32xf32>
    %29 = tpu.matmul %27, %28, %cst_23 {dimension_numbers = #tpu.dot_dimension_numbers<[1], [0], [0], [1], [0, 0, 1, 1], [], []>} : vector<16x32xbf16>, vector<32x32xbf16>, vector<16x32xf32> -> vector<16x32xf32>
    %c0_24 = arith.constant 0 : index
    %c0_25 = arith.constant 0 : index
    %30 = vector.load %arg9[%c0_24, %c0_25] : memref<32x32xbf16, #tpu.memory_space<vmem>>, vector<32x32xbf16>
    %cst_26 = arith.constant dense<0.000000e+00> : vector<16x32xf32>
    %31 = tpu.matmul %21, %30, %cst_26 {dimension_numbers = #tpu.dot_dimension_numbers<[1], [0], [0], [1], [0, 0, 1, 1], [], []>} : vector<16x32xbf16>, vector<32x32xbf16>, vector<16x32xf32> -> vector<16x32xf32>
    %32 = arith.addf %29, %31 : vector<16x32xf32>
    %c0_27 = arith.constant 0 : index
    %c0_28 = arith.constant 0 : index
    %33 = vector.load %arg10[%c0_27, %c0_28] : memref<1x32xf32, #tpu.memory_space<vmem>>, vector<1x32xf32>
    %34 = vector.broadcast %33 : vector<1x32xf32> to vector<16x32xf32>
    %35 = arith.addf %32, %34 : vector<16x32xf32>
    %cst_29 = arith.constant 0.000000e+00 : f32
    %36 = vector.broadcast %cst_29 : f32 to vector<16x32xf32>
    %37 = arith.maximumf %35, %36 : vector<16x32xf32>
    %38 = arith.truncf %37 : vector<16x32xf32> to vector<16x32xbf16>
    %39 = vector.shape_cast %38 : vector<16x32xbf16> to vector<1x16x32xbf16>
    "tpu.trace_start"() <{level = 10 : i32, message = "bnm,bmf->bnf"}> : () -> ()
    %cst_30 = arith.constant dense<0.000000e+00> : vector<1x16x32xf32>
    %40 = tpu.matmul %0, %39, %cst_30 {dimension_numbers = #tpu.dot_dimension_numbers<[2], [1], [1], [2], [0, 0, 0, 1, 1, 2], [0], [0]>} : vector<1x16x16xbf16>, vector<1x16x32xbf16>, vector<1x16x32xf32> -> vector<1x16x32xf32>
    "tpu.trace_stop"() : () -> ()
    %41 = vector.broadcast %1 : vector<1x16x1xf32> to vector<1x16x32xf32>
    %42 = arith.mulf %40, %41 : vector<1x16x32xf32>
    %43 = vector.shape_cast %42 : vector<1x16x32xf32> to vector<16x32xf32>
    %44 = arith.truncf %43 : vector<16x32xf32> to vector<16x32xbf16>
    %c0_31 = arith.constant 0 : index
    %c0_32 = arith.constant 0 : index
    %45 = vector.load %arg11[%c0_31, %c0_32] : memref<32x32xbf16, #tpu.memory_space<vmem>>, vector<32x32xbf16>
    %cst_33 = arith.constant dense<0.000000e+00> : vector<16x32xf32>
    %46 = tpu.matmul %44, %45, %cst_33 {dimension_numbers = #tpu.dot_dimension_numbers<[1], [0], [0], [1], [0, 0, 1, 1], [], []>} : vector<16x32xbf16>, vector<32x32xbf16>, vector<16x32xf32> -> vector<16x32xf32>
    %c0_34 = arith.constant 0 : index
    %c0_35 = arith.constant 0 : index
    %47 = vector.load %arg12[%c0_34, %c0_35] : memref<32x32xbf16, #tpu.memory_space<vmem>>, vector<32x32xbf16>
    %cst_36 = arith.constant dense<0.000000e+00> : vector<16x32xf32>
    %48 = tpu.matmul %38, %47, %cst_36 {dimension_numbers = #tpu.dot_dimension_numbers<[1], [0], [0], [1], [0, 0, 1, 1], [], []>} : vector<16x32xbf16>, vector<32x32xbf16>, vector<16x32xf32> -> vector<16x32xf32>
    %49 = arith.addf %46, %48 : vector<16x32xf32>
    %c0_37 = arith.constant 0 : index
    %c0_38 = arith.constant 0 : index
    %50 = vector.load %arg13[%c0_37, %c0_38] : memref<1x32xf32, #tpu.memory_space<vmem>>, vector<1x32xf32>
    %51 = vector.broadcast %50 : vector<1x32xf32> to vector<16x32xf32>
    %52 = arith.addf %49, %51 : vector<16x32xf32>
    %cst_39 = arith.constant 0.000000e+00 : f32
    %53 = vector.broadcast %cst_39 : f32 to vector<16x32xf32>
    %54 = arith.maximumf %52, %53 : vector<16x32xf32>
    %55 = vector.shape_cast %54 : vector<16x32xf32> to vector<1x16x32xf32>
    %cst_40 = arith.constant 0.000000e+00 : f32
    %56 = vector.broadcast %cst_40 : f32 to vector<1x16x1xf32>
    %57 = arith.cmpf ogt, %2, %56 : vector<1x16x1xf32>
    %cst_41 = arith.constant -3.000000e+38 : f32
    %58 = vector.shape_cast %57 : vector<1x16x1xi1> to vector<1x16x1xi1>
    %59 = vector.broadcast %58 : vector<1x16x1xi1> to vector<1x16x32xi1>
    %60 = vector.broadcast %cst_41 : f32 to vector<1x16x32xf32>
    %61 = arith.select %59, %55, %60 : vector<1x16x32xi1>, vector<1x16x32xf32>
    %cst_42 = arith.constant dense<0xFF800000> : vector<1x32xf32>
    %62 = vector.multi_reduction <maximumf>, %61, %cst_42 [1] : vector<1x16x32xf32> to vector<1x32xf32>
    %c0_43 = arith.constant 0 : index
    %c0_44 = arith.constant 0 : index
    %c0_45 = arith.constant 0 : index
    %63 = vector.load %arg14[%c0_43, %c0_44, %c0_45] : memref<1x1x32xf32, #tpu.memory_space<vmem>>, vector<1x1x32xf32>
    %64 = vector.shape_cast %63 : vector<1x1x32xf32> to vector<1x32xf32>
    %65 = vector.shape_cast %62 : vector<1x32xf32> to vector<1x1x32xf32>
    tpu.vector_store %arg14[%c0_43, %c0_44, %c0_45], %65 {strides = array<i32>} : memref<1x1x32xf32, #tpu.memory_space<vmem>>, vector<1x1x32xf32>,
    return
  }
  func.func @transform_0(%arg0: i32) -> (i32, i32, i32) {
    %c0_i32 = arith.constant 0 : i32
    %c0_i32_0 = arith.constant 0 : i32
    %c0_i32_1 = arith.constant 0 : i32
    return %arg0, %c0_i32, %c0_i32_0 : i32, i32, i32
  }
  func.func @transform_1(%arg0: i32) -> (i32, i32, i32) {
    %c0_i32 = arith.constant 0 : i32
    %c0_i32_0 = arith.constant 0 : i32
    %c0_i32_1 = arith.constant 0 : i32
    return %arg0, %c0_i32, %c0_i32_0 : i32, i32, i32
  }
  func.func @transform_2(%arg0: i32) -> (i32, i32, i32) {
    %c0_i32 = arith.constant 0 : i32
    %c0_i32_0 = arith.constant 0 : i32
    %c0_i32_1 = arith.constant 0 : i32
    return %arg0, %c0_i32, %c0_i32_0 : i32, i32, i32
  }
  func.func @transform_3(%arg0: i32) -> (i32, i32, i32) {
    %c0_i32 = arith.constant 0 : i32
    %c0_i32_0 = arith.constant 0 : i32
    %c0_i32_1 = arith.constant 0 : i32
    return %arg0, %c0_i32, %c0_i32_0 : i32, i32, i32
  }
  func.func @transform_4(%arg0: i32) -> (i32, i32) {
    %c0_i32 = arith.constant 0 : i32
    %c0_i32_0 = arith.constant 0 : i32
    %c0_i32_1 = arith.constant 0 : i32
    return %c0_i32, %c0_i32_0 : i32, i32
  }
  func.func @transform_5(%arg0: i32) -> (i32, i32) {
    %c0_i32 = arith.constant 0 : i32
    %c0_i32_0 = arith.constant 0 : i32
    %c0_i32_1 = arith.constant 0 : i32
    return %c0_i32, %c0_i32_0 : i32, i32
  }
  func.func @transform_6(%arg0: i32) -> (i32, i32) {
    %c0_i32 = arith.constant 0 : i32
    %c0_i32_0 = arith.constant 0 : i32
    %c0_i32_1 = arith.constant 0 : i32
    return %c0_i32, %c0_i32_0 : i32, i32
  }
  func.func @transform_7(%arg0: i32) -> (i32, i32) {
    %c0_i32 = arith.constant 0 : i32
    %c0_i32_0 = arith.constant 0 : i32
    %c0_i32_1 = arith.constant 0 : i32
    return %c0_i32, %c0_i32_0 : i32, i32
  }
  func.func @transform_8(%arg0: i32) -> (i32, i32) {
    %c0_i32 = arith.constant 0 : i32
    %c0_i32_0 = arith.constant 0 : i32
    %c0_i32_1 = arith.constant 0 : i32
    return %c0_i32, %c0_i32_0 : i32, i32
  }
  func.func @transform_9(%arg0: i32) -> (i32, i32) {
    %c0_i32 = arith.constant 0 : i32
    %c0_i32_0 = arith.constant 0 : i32
    %c0_i32_1 = arith.constant 0 : i32
    return %c0_i32, %c0_i32_0 : i32, i32
  }
  func.func @transform_10(%arg0: i32) -> (i32, i32) {
    %c0_i32 = arith.constant 0 : i32
    %c0_i32_0 = arith.constant 0 : i32
    %c0_i32_1 = arith.constant 0 : i32
    return %c0_i32, %c0_i32_0 : i32, i32
  }
  func.func @transform_11(%arg0: i32) -> (i32, i32) {
    %c0_i32 = arith.constant 0 : i32
    %c0_i32_0 = arith.constant 0 : i32
    %c0_i32_1 = arith.constant 0 : i32
    return %c0_i32, %c0_i32_0 : i32, i32
  }
  func.func @transform_12(%arg0: i32) -> (i32, i32) {
    %c0_i32 = arith.constant 0 : i32
    %c0_i32_0 = arith.constant 0 : i32
    %c0_i32_1 = arith.constant 0 : i32
    return %c0_i32, %c0_i32_0 : i32, i32
  }
  func.func @transform_13(%arg0: i32) -> (i32, i32, i32) {
    %c0_i32 = arith.constant 0 : i32
    %c0_i32_0 = arith.constant 0 : i32
    %c0_i32_1 = arith.constant 0 : i32
    return %arg0, %c0_i32, %c0_i32_0 : i32, i32, i32
  }
}

</mosaic_0001>

<bundles_post_ra>
// kernel: tpu_custom_call.1
= control target key start
LH: loop header
LB: loop body
LE: loop exit
PB: predicated region body
PF: predicated region fallthrough
CT: control target
= control target key end

     0   :  { %s1684_s0 = inlined_call_operand.vmem [shape: bf16[2,16,8], index: 0, kind: input, shape index: {}]   ;;  %s1685_s1 = inlined_call_operand.vmem [shape: bf16[2,16,16], index: 1, kind: input, shape index: {}]   ;;  %s1686_s2 = inlined_call_operand.vmem [shape: f32[2,16,1], index: 2, kind: input, shape index: {}]   ;;  %s1687_s3 = inlined_call_operand.vmem [shape: f32[2,16,1], index: 3, kind: input, shape index: {}]   ;;  %s1688_s4 = inlined_call_operand.vmem [shape: bf16[8,32], index: 4, kind: input, shape index: {}]   ;;  %s1689_s5 = inlined_call_operand.vmem [shape: bf16[8,32], index: 5, kind: input, shape index: {}]   ;;  %s1690_s6 = inlined_call_operand.vmem [shape: f32[1,32], index: 6, kind: input, shape index: {}]   ;;  %s1691_s7 = inlined_call_operand.vmem [shape: bf16[32,32], index: 7, kind: input, shape index: {}]   ;;  %s1692_s8 = inlined_call_operand.vmem [shape: bf16[32,32], index: 8, kind: input, shape index: {}]   ;;  %s1693_s9 = inlined_call_operand.vmem [shape: f32[1,32], index: 9, kind: input, shape index: {}]   ;;  %s1694_s10 = inlined_call_operand.vmem [shape: bf16[32,32], index: 10, kind: input, shape index: {}]   ;;  %s1695_s11 = inlined_call_operand.vmem [shape: bf16[32,32], index: 11, kind: input, shape index: {}]   ;;  %s1696_s12 = inlined_call_operand.vmem [shape: f32[1,32], index: 12, kind: input, shape index: {}]   ;;  %s1697_s13 = inlined_call_operand.hbm [shape: f32[2,1,32], index: 13, kind: output, shape index: {}]  }
   0x1   :  { %1707 = sst [smem:[#allocation12_spill]] %s1697_s13 }
   0x2   :  { %18 = vsyncpa [#allocation3], 0 }
   0x3   :  { %20 = vsyncpa [#allocation3 + $0x1], 0  ;;  %s1482_s25 = smov 0   ;;  %s1484_s26 = smov 0  }
   0x4   :  { %s1486_s27 = smov 0   ;;  %s1488_s28 = smov 0  }
   0x5 LB: > { %1708 = sst [smem:[#allocation5_spill]] %s1394_s25  ;;  %s1503_s29 = sadd.s32 4294967295, %s1406_s28   ;;  %s1406_s28 = sphi %s1488_s28, %s1723_s28   ;;  %s1402_s27 = sphi %s1486_s27, %s1725_s27   ;;  %s1398_s26 = sphi %s1484_s26, %s1727_s26   ;;  %s1394_s25 = sphi %s1482_s25, %s1726_s25  }
   0x6   : > { %1709 = sst [smem:[#allocation6_spill]] %s1402_s27  ;;  %s1167_s30 = sadd.s32 4294967294, %s1406_s28  }
   0x7   : > { %1710 = sst [smem:[#allocation7_spill]] %s1406_s28  ;;  %s1507_s14 = sadd.s32 1, %s1406_s28  }
   0x8   : > { %1711 = sst [smem:[#allocation8_spill]] %s1507_s14  ;;  %s326_s15 = sadd.s32 1, %s1402_s27 }
   0x9   : > { %s323_s16 = ssub.s32 %s1406_s28, %s1507_s14  ;;  %p336_p0 = scmp.ne.s32.totalorder %s1402_s27, %s1398_s26 }
   0xa   : > { %p324_p1 = scmp.eq.s32.totalorder %s323_s16, 0  ;;  %p337_p2 = scmp.eq.s32.totalorder %s1503_s29, 1 }
   0xb   : > { %p342_p3 = scmp.ne.s32.totalorder %s1398_s26, %s1394_s25  ;;  %p343_p4 = scmp.eq.s32.totalorder %s1167_s30, 1 }
   0xc   : > { %s1518_s17 = scalar_select %p324_p1, %s1402_s27, %s326_s15  }
   0xd   : > { %p1520_p5 = por %p337_p2, %p336_p0  ;;  %p1524_p6 = por %p343_p4, %p342_p3 }
   0xe   : > { %1712 = sst [smem:[#allocation9_spill]] %s1518_s17  ;;  %p1170_p7 = scmp.ge.s32.totalorder %s1406_s28, 1 }
   0xf   : > { %s1713_s18 = scalar_select %p1520_p5, 1, 0 }
  0x10   : > { %s1715_s19 = scalar_select %p1524_p6, 1, 0 }
  0x11   : > { %1714 = sst [smem:[#allocation10_spill]] %s1713_s18  ;;  %p420_p8 = scmp.lt.s32.totalorder %s1406_s28, 3 }
  0x12   : > { %1716 = sst [smem:[#allocation11_spill]] %s1715_s19 }
  0x13   : > { %p421_p9 = pnand %p1170_p7, %p420_p8 }
  0x14   : > { %p478_p10 = scmp.lt.s32.totalorder (!%p421_p9), %s1503_s29, 1  ;;  %s476_s23 = sand.u32 (!%p421_p9), 1, %s1398_s26  }
  0x15   : > { %424 = sbr.rel (%p421_p9) target bundleno = 1285 (0x505), region = 72  ;;  %s1201_s30 = sshll.u32 (!%p421_p9), %s1503_s29, 4 }
  0x16   : > { %s477_s15 = scalar_lea.vmem (!%p421_p9), [#allocation2], %s476_s23  ;;  %s1718_s27 = sld [smem:[#allocation12_spill]] (!%p421_p9) }
  0x17   : > { %s1064_s17 = scalar_lea.sflag (!%p421_p9), [#allocation3], %s476_s23  ;;  %s1411_s19 = smov (!%p421_p9), [#allocation2]  }
  0x1a   : > { %v1408_v0 = vmov 0.0   ;;  %vm1409_vm0 = vmmov 0   ;;  %s1535_s20 = scalar_select %p478_p10, %s1503_s29, 1  ;;  %v1410_v1 = vmov 0   ;;  %v577_v2 = vld [vmem:[%s1689_s5] sm:$0xf] }
  0x1b   : > { %1230 = vmatprep.subr.bf16.mxu0 %v1408_v0  ;;  %1232 = vmatprep.mubr.msk.bf16.mxu0 %vm1409_vm0, %v1408_v0  ;;  %vm582_vm1 = vcmask 1043456   ;;  %v576_v4 = vld [vmem:[%s1688_s4] sm:$0xf]  ;;  %vm518_vm2 = vcmask 130048   ;;  %vm578_vm3 = vcmask 64512   ;;  %v1338_v23 = vld [vmem:[%s1692_s8 + $0x8] sm:$0xff]  }
  0x1c   : > { %1334 = vset.pattern.permute.xlu0 %v1410_v1  ;;  %1236 = vmatprep.subr.bf16.mxu1 %v1408_v0  ;;  %s1204_s21 = sshll.u32 %s1535_s20, 3  ;;  %s1206_s22 = sshll.u32 %s1535_s20, 4  ;;  %v584_v5 = vsel %vm582_vm1, %v577_v2, 0  ;;  %v631_v9 = vsel %vm582_vm1, %v576_v4, 0  ;;  %v1339_v24 = vld [vmem:[%s1692_s8] sm:$0xff]   ;;  %vm750_vm4 = vcmask 261120  }
  0x1d   : > { %1238 = vmatprep.mubr.msk.bf16.mxu1 %vm1409_vm0, %v1408_v0  ;;  %1335 = vset.pattern.permute.xlu1 %v1410_v1  ;;  %s482_s16 = scalar_lea.vmem %s1684_s0, %s1204_s21  ;;  %s487_s14 = scalar_lea.vmem %s1685_s1, %s1204_s21  ;;  %v1184_v27 = vld [vmem:[%s1690_s6] ss:$0 sm:$0xff]  ;;  %v1340_v37 = vld [vmem:[%s1691_s7 + $0x8] sm:$0xff]   ;;  %vm1061_vm9 = vcmask 253952  }
  0x1e   : > { %s492_s28 = scalar_lea.vmem %s1686_s2, %s1206_s22  ;;  %v1336_v3 = vld [vmem:[%s482_s16] sm:$0xff]   ;;  %1237 = vmatpush3.bf16.msra.mxu1 %v584_v5  ;;  %v1342_v50 = vld [vmem:[%s1695_s11 + $0x8] sm:$0xff]   ;;  %s497_s21 = scalar_lea.vmem %s1687_s3, %s1206_s22 }
  0x1f   : > { %v1561_v6 = vld [vmem:[%s487_s14] sm:$0xff]   ;;  %1231 = vmatpush3.bf16.msra.mxu0 %v1336_v3  ;;  %v502_v8 = vld [vmem:[%s492_s28 + $0x8] sm:$0xff]  ;;  %1248 = vmatprep.subr.bf16.mxu1 %v1408_v0  ;;  %s1076_s16 = sshll.u32 %s477_s15, 4  ;;  %s1719_s14 = smov %s1718_s27  ;;  %s1077_s16 = int_to_ptr.vmem [resolvable:$true] %s1076_s16 }
  0x20   : > { %v501_v7 = vld [vmem:[%s492_s28] sm:$0xff]  ;;  %1242 = vmatprep.subr.bf16.mxu0 %v1408_v0  ;;  %v1344_v2 = vld [vmem:[%s1694_s10 + $0x8] sm:$0xff]   ;;  %s1074_s28 = scalar_lea.hbm %s1718_s27, %s1201_s30  ;;  %s1346_s18 = scalar_lea.vmem %s1077_s16, 16 }
  0x21   : > { %565 = vperm.xlu0 %1334, %v501_v7   ;;  %1239 = vmatmul.mubr.msk.bf16.vlgmr.msra.gmra.mxu1 %vm578_vm3, %v1336_v3  ;;  %v1341_v38 = vld [vmem:[%s1691_s7] sm:$0xff]   ;;  %v504_v5 = vld [vmem:[%s497_s21 + $0x8] sm:$0xff]  ;;  %p1347_p11 = scmp.ne.s32.totalorder %s1077_s16, %s1346_s18 }
  0x22   : > { %1233 = vmatmul.mubr.msk.bf16.vlgmr.msra.gmra.mxu0 %vm518_vm2, %v1561_v6  ;;  %1250 = vmatprep.mubr.msk.bf16.mxu1 %vm1409_vm0, %v1408_v0  ;;  %v1343_v51 = vld [vmem:[%s1695_s11] sm:$0xff]   ;;  %vm1039_vm6 = vcmp.gt.f32.partialorder %v504_v5, 0.0 }
  0x23   : > { %1243 = vmatpush3.bf16.msra.mxu0 %v631_v9  ;;  %1244 = vmatprep.mubr.msk.bf16.mxu0 %vm1409_vm0, %v1408_v0  ;;  %v1192_v54 = vld [vmem:[%s1693_s9] ss:$0 sm:$0xff]  ;;  %v1041_v7 = vsel %vm1039_vm6, 1, %v1410_v1  ;;  %p1348_p12 = pnand %p1347_p11, %p1520_p5 }
  0x24   : > { %1254 = vmatprep.subr.bf16.mxu0 %v1408_v0  ;;  %v1345_v3 = vld [vmem:[%s1694_s10] sm:$0xff]  }
  0x25   : > { %570 = vperm.xlu0 %1334, %v502_v8   ;;  %v503_v4 = vld [vmem:[%s497_s21] sm:$0xff]  ;;  %p1349_p13 = pneg %p1348_p12  ;;  %s1350_s21 = sshll.u32 %s1411_s19, 4  ;;  %s1351_s21 = int_to_ptr.vmem [resolvable:$false] %s1350_s21 }
  0x26   : > { %vm1038_vm5 = vcmp.gt.f32.partialorder %v503_v4, 0.0  ;;  %s1352_s29 = scalar_lea.vmem %s1351_s21, 32  ;;  %p1353_p0 = scmp.lt.s32.totalorder %s1077_s16, %s1351_s21 }
  0x27   : > { %p1354_p1 = scmp.lt.s32.totalorder %s1352_s29, %s1346_s18 }
  0x29   : > { %p1355_p2 = por %p1354_p1, %p1353_p0 }
  0x2b   : > { %p1356_p3 = pnand %p1355_p2, %p1349_p13 }
  0x9c   : > { %v1572_v10 = vpop.permute.xlu0 %565 }
  0xa0   : > { %v1574_v13 = vpop.permute.xlu0 %570 }
  0xe1   : > { %v620_v19 = vpop.f32.mrf.mxu1 }
  0xe2   : > { %v556_v11 = vpop.f32.mrf.mxu0 }
  0xe3   : > { %v573_v15 = vmul.f32 %v1572_v10, %v556_v11  ;;  %v1240_v20 = vpop.f32.mrf.mxu1 }
  0xe4   : > { %v1234_v12 = vpop.f32.mrf.mxu0 }
  0xe5   : > { %v623_v21 = vpop.f32.mrf.mxu1 }
  0xe6   : > { %v559_v14 = vpop.f32.mrf.mxu0 }
  0xe7   : > { %v574_v16 = vmul.f32 %v1574_v13, %v559_v14  ;;  %v1241_v22 = vpop.f32.mrf.mxu1 }
  0xe8   : > { %v1235_v17 = vpop.f32.mrf.mxu0 }
  0xe9   : > { %v575_v18 = vpack.c.bf16 %v574_v16, %v573_v15 }
  0xeb   : > { %1245 = vmatmul.mubr.msk.bf16.vlgmr.msra.gmra.mxu0 %vm578_vm3, %v575_v18 }
  0xec   : > { %1258 = vmatprep.mubr.msk.bf16.mxu0 %vm1409_vm0, %v1408_v0  ;;  %1255 = vmatpush3.bf16.msra.mxu0 %v1338_v23 }
  0xed   : > { %1256 = vmatprep.subr.bf16.mxu0 %v1408_v0 }
  0xf0   : > { %1257 = vmatpush3.bf16.msra.mxu0 %v1339_v24 }
  0xf1   : > { %1270 = vmatprep.subr.bf16.mxu0 %v1408_v0 }
 0x1ab   : > { %v667_v25 = vpop.f32.mrf.mxu0 }
 0x1ac   : > { %v668_v26 = vadd.f32 %v667_v25, %v620_v19 }
 0x1ad   : > { %v1246_v28 = vpop.f32.mrf.mxu0 }
 0x1ae   : > { %v681_v30 = vadd.f32 %v1184_v27, %v668_v26 }
 0x1af   : > { %v670_v29 = vpop.f32.mrf.mxu0 }
 0x1b0   : > { %v671_v31 = vadd.f32 %v670_v29, %v623_v21  ;;  %v683_v34 = vmax.f32 %v681_v30, 0.0 }
 0x1b1   : > { %v1247_v32 = vpop.f32.mrf.mxu0 }
 0x1b2   : > { %v682_v33 = vadd.f32 %v1184_v27, %v671_v31 }
 0x1b4   : > { %v684_v35 = vmax.f32 %v682_v33, 0.0 }
 0x1b6   : > { %v685_v36 = vpack.c.bf16 %v684_v35, %v683_v34 }
 0x1b8   : > { %1249 = vmatpush3.bf16.msra.mxu1 %v685_v36  ;;  %1259 = vmatmul.mubr.msk.bf16.vlgmr.msra.gmra.mxu0 %vm750_vm4, %v685_v36 }
 0x1b9   : > { %1262 = vmatprep.subr.bf16.mxu1 %v1408_v0  ;;  %1272 = vmatprep.mubr.msk.bf16.mxu0 %vm1409_vm0, %v1408_v0 }
 0x1bb   : > { %1251 = vmatmul.mubr.msk.bf16.vlgmr.msra.gmra.mxu1 %vm518_vm2, %v1561_v6 }
 0x1bc   : > { %1266 = vmatprep.mubr.msk.bf16.mxu1 %vm1409_vm0, %v1408_v0  ;;  %1263 = vmatpush3.bf16.msra.mxu1 %v1340_v37 }
 0x1bd   : > { %1264 = vmatprep.subr.bf16.mxu1 %v1408_v0 }
 0x1c0   : > { %1265 = vmatpush3.bf16.msra.mxu1 %v1341_v38 }
 0x1c1   : > { %1276 = vmatprep.subr.bf16.mxu1 %v1408_v0 }
 0x278   : > { %v788_v39 = vpop.f32.mrf.mxu0 }
 0x27a   : > { %v1260_v40 = vpop.f32.mrf.mxu0 }
 0x27b   : > { %v720_v41 = vpop.f32.mrf.mxu1 }
 0x27c   : > { %v791_v42 = vpop.f32.mrf.mxu0  ;;  %v727_v46 = vmul.f32 %v720_v41, %v1572_v10 }
 0x27d   : > { %v1252_v43 = vpop.f32.mrf.mxu1 }
 0x27e   : > { %v1261_v44 = vpop.f32.mrf.mxu0 }
 0x27f   : > { %v723_v45 = vpop.f32.mrf.mxu1 }
 0x280   : > { %v728_v47 = vmul.f32 %v723_v45, %v1574_v13 }
 0x281   : > { %v1253_v48 = vpop.f32.mrf.mxu1 }
 0x282   : > { %v729_v49 = vpack.c.bf16 %v728_v47, %v727_v46 }
 0x284   : > { %1267 = vmatmul.mubr.msk.bf16.vlgmr.msra.gmra.mxu1 %vm750_vm4, %v729_v49 }
 0x285   : > { %1280 = vmatprep.mubr.msk.bf16.mxu1 %vm1409_vm0, %v1408_v0  ;;  %1277 = vmatpush3.bf16.msra.mxu1 %v1342_v50 }
 0x286   : > { %1278 = vmatprep.subr.bf16.mxu1 %v1408_v0 }
 0x289   : > { %1279 = vmatpush3.bf16.msra.mxu1 %v1343_v51 }
 0x344   : > { %v844_v52 = vpop.f32.mrf.mxu1 }
 0x345   : > { %v845_v53 = vadd.f32 %v844_v52, %v788_v39 }
 0x346   : > { %v1268_v55 = vpop.f32.mrf.mxu1 }
 0x347   : > { %v858_v57 = vadd.f32 %v1192_v54, %v845_v53 }
 0x348   : > { %v847_v56 = vpop.f32.mrf.mxu1 }
 0x349   : > { %v848_v58 = vadd.f32 %v847_v56, %v791_v42  ;;  %v860_v61 = vmax.f32 %v858_v57, 0.0 }
 0x34a   : > { %v1269_v59 = vpop.f32.mrf.mxu1 }
 0x34b   : > { %v859_v60 = vadd.f32 %v1192_v54, %v848_v58 }
 0x34d   : > { %v861_v62 = vmax.f32 %v859_v60, 0.0 }
 0x34f   : > { %v862_v63 = vpack.c.bf16 %v861_v62, %v860_v61 }
 0x351   : > { %1271 = vmatpush3.bf16.msra.mxu0 %v862_v63  ;;  %1281 = vmatmul.mubr.msk.bf16.vlgmr.msra.gmra.mxu1 %vm750_vm4, %v862_v63 }
 0x352   : > { %1284 = vmatprep.subr.bf16.mxu0 %v1408_v0 }
 0x354   : > { %1273 = vmatmul.mubr.msk.bf16.vlgmr.msra.gmra.mxu0 %vm518_vm2, %v1561_v6  ;;  %v1040_v6 = vsel %vm1038_vm5, 1, %v1410_v1  ;;  %v1200_v1 = vld [vmem:[%s1696_s12] ss:$0 sm:$0xff] }
 0x355   : > { %1288 = vmatprep.mubr.msk.bf16.mxu0 %vm1409_vm0, %v1408_v0  ;;  %1285 = vmatpush3.bf16.msra.mxu0 %v1344_v2 }
 0x356   : > { %1286 = vmatprep.subr.bf16.mxu0 %v1408_v0  ;;  %1043 = vperm.xlu1 %1335, %v1040_v6  }
 0x359   : > { %1287 = vmatpush3.bf16.msra.mxu0 %v1345_v3 }
 0x35a   : > { %1046 = vperm.xlu1 %1335, %v1041_v7  }
 0x3d1   : > { %v1044_v22 = vpop.permute.xlu1 %1043 }
 0x3d2   : > { %vm1048_vm7 = vcmp.eq.s32.totalorder %v1044_v22, 1 }
 0x3d5   : > { %v1047_v28 = vpop.permute.xlu1 %1046 }
 0x3d6   : > { %vm1049_vm8 = vcmp.eq.s32.totalorder %v1047_v28, 1 }
 0x411   : > { %v964_v0 = vpop.f32.mrf.mxu1 }
 0x413   : > { %v1282_v8 = vpop.f32.mrf.mxu1 }
 0x414   : > { %v897_v9 = vpop.f32.mrf.mxu0 }
 0x415   : > { %v967_v11 = vpop.f32.mrf.mxu1  ;;  %v904_v16 = vmul.f32 %v897_v9, %v1572_v10 }
 0x416   : > { %v1274_v12 = vpop.f32.mrf.mxu0 }
 0x417   : > { %v1283_v14 = vpop.f32.mrf.mxu1 }
 0x418   : > { %v900_v15 = vpop.f32.mrf.mxu0 }
 0x419   : > { %v905_v17 = vmul.f32 %v900_v15, %v1574_v13 }
 0x41a   : > { %v1275_v18 = vpop.f32.mrf.mxu0 }
 0x41b   : > { %v906_v19 = vpack.c.bf16 %v905_v17, %v904_v16 }
 0x41d   : > { %1289 = vmatmul.mubr.msk.bf16.vlgmr.msra.gmra.mxu0 %vm750_vm4, %v906_v19 }
 0x4dd   : > { %v1020_v20 = vpop.f32.mrf.mxu0 }
 0x4de   : > { %v1021_v21 = vadd.f32 %v1020_v20, %v964_v0 }
 0x4df   : > { %v1290_v23 = vpop.f32.mrf.mxu0 }
 0x4e0   : > { %v1034_v24 = vadd.f32 %v1200_v1, %v1021_v21 }
 0x4e1   : > { %v1023_v25 = vpop.f32.mrf.mxu0 }
 0x4e2   : > { %v1036_v26 = vmax.f32 %v1034_v24, 0.0  ;;  %v1024_v27 = vadd.f32 %v1023_v25, %v967_v11 }
 0x4e3   : > { %v1291_v10 = vpop.f32.mrf.mxu0 }
 0x4e4   : > { %v1035_v13 = vadd.f32 %v1200_v1, %v1024_v27  ;;  %v1050_v29 = vsel %vm1048_vm7, %v1036_v26, -3e+38 }
 0x4e5   : > { %v1052_v32 = vsel %vm750_vm4, %v1050_v29, -inf }
 0x4e6   : > { %v1037_v30 = vmax.f32 %v1035_v13, 0.0 }
 0x4e8   : > { %v1051_v31 = vsel %vm1049_vm8, %v1037_v30, -3e+38 }
 0x4e9   : > { %v1053_v33 = vsel %vm750_vm4, %v1051_v31, -inf }
 0x4ea   : > { %v1054_v34 = vmax.f32 %v1052_v32, %v1053_v33 }
 0x4ec   : > { %v1055_v35 = vrot.slane %v1054_v34, 4 }
 0x4ee   : > { %v1056_v36 = vmax.f32 %v1054_v34, %v1055_v35 }
 0x4f0   : > { %v1057_v37 = vrot.slane %v1056_v36, 2 }
 0x4f2   : > { %v1058_v38 = vmax.f32 %v1056_v36, %v1057_v37 }
 0x4f4   : > { %v1059_v39 = vrot.slane %v1058_v38, 1 }
 0x4f6   : > { %v1060_v40 = vmax.f32 %v1058_v38, %v1059_v39 }
 0x4f8   : > { %1062 = vst.msk [vmem:[%s477_s15] sm:$0x1] %vm1061_vm9, %v1060_v40 }
 0x4f9   : > { %1359 = shalt.err (!%p1356_p3)
}
 0x4fa   : > { %s1360_s20 = scalar_lea.hbm %s1074_s28, 16  ;;  %s1364_s30 = scalar_lea.hbm %s1719_s14, 32 }
 0x4fb   : > { %p1361_p4 = scmp.ne.s32.totalorder %s1074_s28, %s1360_s20  ;;  %p1365_p9 = scmp.lt.s32.totalorder %s1074_s28, %s1719_s14 }
 0x4fc   : > { %p1366_p10 = scmp.lt.s32.totalorder %s1364_s30, %s1360_s20 }
 0x4fd   : > { %p1362_p7 = pnand %p1361_p4, %p1520_p5 }
 0x4fe   : > { %p1367_p11 = por %p1366_p10, %p1365_p9 }
 0x4ff   : > { %p1363_p8 = pneg %p1362_p7 }
 0x501   : > { %p1368_p12 = pnand %p1367_p11, %p1363_p8 }
 0x503   : > { %1371 = shalt.err (!%p1368_p12)
}
 0x504   : > { %1292 = dma.vmem_to_hbm [thread:$0]  (%p1520_p5), %s1077_s16, 16, %s1074_s28, %s1064_s17  }
 0x505 PF: > { %s1720_s25 = sld [smem:[#allocation7_spill]] }
 0x506   : > { %s1721_s27 = sld [smem:[#allocation5_spill]] }
 0x50b   : > { %p1298_p13 = scmp.ge.s32.totalorder %s1720_s25, 2 }
 0x50c   : > { %s1088_s19 = sand.u32 1, %s1721_s27  }
 0x50d   : > { %p1295_p0 = pnand %p1298_p13, %p1524_p6  ;;  %s1089_s21 = scalar_lea.sflag [#allocation3], %s1088_s19 }
 0x50f   : > { %p1296_p1 = pneg %p1295_p0 }
 0x511   : > { %1389 = dma.done.wait (%p1296_p1), %s1089_s21, 16  }
 0x512   : > { %1391 = vsyncadd (%p1296_p1), %s1089_s21, 4294967280  ;;  %s1723_s28 = sld [smem:[#allocation8_spill]]  ;;  %s1726_s25 = smov %s1398_s26 }
 0x513   : > { %s1724_s29 = sld [smem:[#allocation6_spill]] }
 0x514   : > { %s1725_s27 = sld [smem:[#allocation9_spill]] }
 0x518   : > { %p23_p2 = scmp.ge.s32.totalorder %s1723_s28, 4  }
 0x519   : > { %s1727_s26 = smov %s1724_s29 }
 0x51a   :  { %25 = sbr.rel (!%p23_p2) target bundleno = 5 (0x5), region = 116 }
 0x51f   :  { %1093 = vsyncpa [#allocation3], 1 }
 0x520   :  { %1095 = vsyncpa [#allocation3 + $0x1], 1 }

</bundles_post_ra>
